<compile_context>
chip_gen: v7x
topology: tpu7x:2x2x1
jax: 0.10.0
libtpu: 0.0.40
codegen_flags: <defaults>
</compile_context>

<pallas_src>
import functools

import jax
import jax.numpy as jnp
from jax.experimental import pallas as pl
from jax.experimental.pallas import tpu as pltpu

LANE = 128
ROW_ALIGN = 32          # int8 operands tile as (32, 128) on the sublane axis
NEG_INF = -1e30


def _round_up(x, m):
    return ((x + m - 1) // m) * m


def _vmem_capacity_bytes():
    """Physical VMEM per core; conservative (v7x) fallback if query fails."""
    try:
        return int(pltpu.get_tpu_info().vmem_capacity_bytes)
    except Exception:
        return 64 * 1024 * 1024


# ---------------------------------------------------------------------------
# Kernels
# ---------------------------------------------------------------------------
def _transform_kernel(x_ref, w_ref, d_ref, y_ref):
    """y1 = D^-1/2 * (X @ W1); emitted in bf16 for the downstream A-dot."""
    xw = jnp.dot(x_ref[...], w_ref[...], preferred_element_type=jnp.float32)
    y_ref[...] = (d_ref[...] * xw).astype(jnp.bfloat16)


def _layer1_propagate_kernel(a_ref, y1_ref, d_ref, b1_ref, w2_ref, y2_ref):
    """h = relu(D^-1/2 (A+I) y1 + b1);  y2 = D^-1/2 (h @ W2)  (bf16 out)."""
    a = a_ref[...].astype(jnp.bfloat16)                 # int8 -> bf16 (hidden VPU cost)
    agg = jnp.dot(a, y1_ref[...], preferred_element_type=jnp.float32)
    h = jnp.maximum(d_ref[...] * agg + b1_ref[...], 0.0)
    hw2 = jnp.dot(h.astype(jnp.bfloat16), w2_ref[...],
                  preferred_element_type=jnp.float32)
    y2_ref[...] = (d_ref[...] * hw2).astype(jnp.bfloat16)


def _layer2_propagate_kernel(a_ref, y2_ref, d_ref, b2_ref, o_ref, *, num_classes):
    """z = D^-1/2 (A+I) y2 + b2; masked log_softmax over padded class axis."""
    a = a_ref[...].astype(jnp.bfloat16)
    agg = jnp.dot(a, y2_ref[...], preferred_element_type=jnp.float32)
    z = d_ref[...] * agg + b2_ref[...]
    col = jax.lax.broadcasted_iota(jnp.int32, z.shape, dimension=1)
    z = jnp.where(col < num_classes, z, NEG_INF)
    m = jnp.max(z, axis=1, keepdims=True)
    lse = jnp.log(jnp.sum(jnp.exp(z - m), axis=1, keepdims=True)) + m
    o_ref[...] = z - lse


def _fused_propagate_kernel(a_ref, y1_ref, d_ref, b1_ref, w2_ref, b2_ref,
                            o_ref, y2_scr, *, num_classes, tm):
    """Both propagation passes with A fully resident in VMEM (read once).

    grid = (2, n_tiles); phase (axis 0) is outermost/sequential:
      phase 0: y2[tile] = D^-1/2 (relu(D^-1/2 (A+I) y1 + b1) @ W2)  -> scratch
      phase 1: out[tile] = log_softmax(D^-1/2 (A+I) y2 + b2)
    """
    phase = pl.program_id(0)
    i = pl.program_id(1)
    row0 = pl.multiple_of(i * tm, tm)
    a_tile = a_ref[pl.ds(row0, tm), :].astype(jnp.bfloat16)

    @pl.when(phase == 0)
    def _():
        agg = jnp.dot(a_tile, y1_ref[...], preferred_element_type=jnp.float32)
        h = jnp.maximum(d_ref[...] * agg + b1_ref[...], 0.0)
        hw2 = jnp.dot(h.astype(jnp.bfloat16), w2_ref[...],
                      preferred_element_type=jnp.float32)
        y2_scr[pl.ds(row0, tm), :] = (d_ref[...] * hw2).astype(jnp.bfloat16)

    @pl.when(phase == 1)
    def _():
        agg = jnp.dot(a_tile, y2_scr[...], preferred_element_type=jnp.float32)
        z = d_ref[...] * agg + b2_ref[...]
        col = jax.lax.broadcasted_iota(jnp.int32, z.shape, dimension=1)
        z = jnp.where(col < num_classes, z, NEG_INF)
        m = jnp.max(z, axis=1, keepdims=True)
        lse = jnp.log(jnp.sum(jnp.exp(z - m), axis=1, keepdims=True)) + m
        o_ref[...] = z - lse


# ---------------------------------------------------------------------------
# Wrapper
# ---------------------------------------------------------------------------
def gcn_forward(x, edge_index, w1, b1, w2, b2, propagate_mode="auto"):
    """Full 2-layer GCN forward. x: [N, F] f32, edge_index: [2, E] int32."""
    N, F_in = x.shape
    H = w1.shape[1]
    C = w2.shape[1]

    Fp = _round_up(F_in, LANE)
    Hp = _round_up(H, LANE)
    Cp = _round_up(C, LANE)

    vmem_cap = _vmem_capacity_bytes()
    vmem_limit = min(vmem_cap // 2, 96 * 1024 * 1024)   # 32 MiB on v7x, 64 MiB v5e/v6e
    N_al = _round_up(max(N, ROW_ALIGN), ROW_ALIGN)

    # ---- choose propagate strategy -----------------------------------------
    tm_fused = min(256, N_al)
    fused_bytes = (N_al * N_al                 # int8 A resident (single buffer)
                   + N_al * Hp * 2             # y1 resident (bf16)
                   + N_al * Cp * 2             # y2 VMEM scratch (bf16)
                   + 4 * tm_fused * N_al       # in-kernel bf16 cast temp + headroom
                   + (8 << 20))                # slack for small operands / pipeline
    if propagate_mode == "auto":
        # Fused only where VMEM is 128 MiB (v5e/v6e, single TensorCore) and fits.
        use_fused = (vmem_cap >= (100 << 20)) and (fused_bytes <= vmem_limit)
    else:
        use_fused = (propagate_mode == "fused")

    # ---- tile geometry (node rows on sublanes, features on lanes) ----------
    if use_fused:
        tm = tm_fused
        N_pad = _round_up(N, tm)
        n_tiles = N_pad // tm
    else:
        # VMEM-adaptive row tile for the streamed int8 A:
        #   per step ~ 2 x (tm x N) int8 double-buffer + (tm x N) bf16 cast temp
        slack = 6 << 20
        resident = N_al * Hp * 2 + Hp * Cp * 2 + (Hp + Cp) * 4
        budget = max(vmem_limit - resident - slack, 2 << 20)
        tm = min(budget // (4 * N_al), budget // (4 * Fp), 512)
        tm = max((int(tm) // ROW_ALIGN) * ROW_ALIGN, ROW_ALIGN)
        tm = min(tm, N_al)
        N_pad = _round_up(N, tm)
        n_tiles = N_pad // tm
        if n_tiles > 1 and n_tiles % 2 == 1:
            # even tile count so the "parallel" axis splits evenly over v7x's 2 TCs
            n_tiles += 1
            N_pad += tm

    # ---- glue: (A + I) built directly in int8 (one fused scatter) ----------
    src, dst = edge_index[0], edge_index[1]
    diag = jnp.arange(N, dtype=edge_index.dtype)
    rows = jnp.concatenate([dst, src, diag])             # symmetrize + self loops
    cols = jnp.concatenate([src, dst, diag])
    a_i8 = jnp.zeros((N_pad, N_pad), jnp.int8).at[rows, cols].set(1)
    # degrees from row-sum of A (matches the reference's .set() de-dup semantics)
    deg = jnp.sum(a_i8, axis=1, dtype=jnp.float32)
    d_inv_sqrt = jnp.where(deg > 0.0, jax.lax.rsqrt(jnp.maximum(deg, 1.0)), 1.0)
    d_inv_sqrt = d_inv_sqrt[:, None].astype(jnp.float32)            # [N_pad, 1]

    # Zero-pad features / weights to lane-dense shapes (math unchanged; padded
    # hidden cols stay 0 through bias+ReLU, padded classes masked pre-softmax).
    xp = jnp.zeros((N_pad, Fp), jnp.bfloat16).at[:N, :F_in].set(x.astype(jnp.bfloat16))
    w1p = jnp.zeros((Fp, Hp), jnp.bfloat16).at[:F_in, :H].set(w1.astype(jnp.bfloat16))
    b1p = jnp.zeros((1, Hp), jnp.float32).at[:, :H].set(
        b1.astype(jnp.float32).reshape(1, H))
    w2p = jnp.zeros((Hp, Cp), jnp.bfloat16).at[:H, :C].set(w2.astype(jnp.bfloat16))
    b2p = jnp.zeros((1, Cp), jnp.float32).at[:, :C].set(
        b2.astype(jnp.float32).reshape(1, C))

    cparams_par = pltpu.CompilerParams(
        dimension_semantics=("parallel",),
        vmem_limit_bytes=vmem_limit,
    )

    def row1(w):                     # 1-D grid, row-tiled, double-buffered stream
        return pl.BlockSpec((tm, w), lambda i: (i, 0))

    def full1(h, w):                 # 1-D grid, loop-invariant, single-buffered
        return pl.BlockSpec((h, w), lambda i: (0, 0), pipeline_mode=pl.Buffered(1))

    bf = 2  # bytes per bf16

    # ---- stage 1: y1 = D^-1/2 (X @ W1) -------------------------------------
    y1 = pl.pallas_call(
        _transform_kernel,
        out_shape=jax.ShapeDtypeStruct((N_pad, Hp), jnp.bfloat16),
        grid=(n_tiles,),
        in_specs=[row1(Fp), full1(Fp, Hp), row1(1)],
        out_specs=row1(Hp),
        compiler_params=cparams_par,
        cost_estimate=pl.CostEstimate(
            flops=2 * N_pad * Fp * Hp, transcendentals=0,
            bytes_accessed=N_pad * Fp * bf + Fp * Hp * bf + N_pad * Hp * bf),
    )(xp, w1p, d_inv_sqrt)

    if not use_fused:
        # ---- stage 2: h = relu(D^-1/2 (A+I) y1 + b1); y2 = D^-1/2 (h @ W2) --
        y2 = pl.pallas_call(
            _layer1_propagate_kernel,
            out_shape=jax.ShapeDtypeStruct((N_pad, Cp), jnp.bfloat16),
            grid=(n_tiles,),
            in_specs=[row1(N_pad), full1(N_pad, Hp), row1(1),
                      full1(1, Hp), full1(Hp, Cp)],
            out_specs=row1(Cp),
            compiler_params=cparams_par,
            cost_estimate=pl.CostEstimate(
                flops=2 * N_pad * N_pad * Hp + 2 * N_pad * Hp * Cp,
                transcendentals=0,
                bytes_accessed=N_pad * N_pad + N_pad * Hp * bf + N_pad * Cp * bf),
        )(a_i8, y1, d_inv_sqrt, b1p, w2p)

        # ---- stage 3: z = D^-1/2 (A+I) y2 + b2 ; log_softmax ----------------
        out_padded = pl.pallas_call(
            functools.partial(_layer2_propagate_kernel, num_classes=C),
            out_shape=jax.ShapeDtypeStruct((N_pad, Cp), jnp.float32),
            grid=(n_tiles,),
            in_specs=[row1(N_pad), full1(N_pad, Cp), row1(1), full1(1, Cp)],
            out_specs=row1(Cp),
            compiler_params=cparams_par,
            cost_estimate=pl.CostEstimate(
                flops=2 * N_pad * N_pad * Cp,
                transcendentals=N_pad * Cp,
                bytes_accessed=N_pad * N_pad + N_pad * Cp * bf + N_pad * Cp * 4),
        )(a_i8, y2, d_inv_sqrt, b2p)
    else:
        # ---- fused stages 2+3: A resident in VMEM, read from HBM once -------
        def row2(w):
            return pl.BlockSpec((tm, w), lambda p, i: (i, 0))

        def full2(h, w):
            return pl.BlockSpec((h, w), lambda p, i: (0, 0),
                                pipeline_mode=pl.Buffered(1))

        out_padded = pl.pallas_call(
            functools.partial(_fused_propagate_kernel, num_classes=C, tm=tm),
            out_shape=jax.ShapeDtypeStruct((N_pad, Cp), jnp.float32),
            grid=(2, n_tiles),                       # phase outermost, sequential
            in_specs=[full2(N_pad, N_pad), full2(N_pad, Hp), row2(1),
                      full2(1, Hp), full2(Hp, Cp), full2(1, Cp)],
            out_specs=row2(Cp),
            scratch_shapes=[pltpu.VMEM((N_pad, Cp), jnp.bfloat16)],
            compiler_params=pltpu.CompilerParams(
                dimension_semantics=("arbitrary", "arbitrary"),
                vmem_limit_bytes=vmem_limit),
            cost_estimate=pl.CostEstimate(
                flops=2 * N_pad * N_pad * (Hp + Cp) + 2 * N_pad * Hp * Cp,
                transcendentals=N_pad * Cp,
                bytes_accessed=N_pad * N_pad + N_pad * Hp * bf + N_pad * Cp * 4),
        )(a_i8, y1, d_inv_sqrt, b1p, w2p, b2p)

    return out_padded[:N, :C]


# ---------------------------------------------------------------------------
# Pure-JAX f32 reference (matches the original PyTorch forward semantics)
# ---------------------------------------------------------------------------
def gcn_reference(x, edge_index, w1, b1, w2, b2):
    N = x.shape[0]
    src, dst = edge_index[0], edge_index[1]
    A = jnp.zeros((N, N), jnp.float32)
    A = A.at[dst, src].set(1.0).at[src, dst].set(1.0)
    A = A.at[jnp.arange(N), jnp.arange(N)].set(1.0)
    d = 1.0 / jnp.sqrt(jnp.sum(A, axis=1))
    a_hat = d[:, None] * A * d[None, :]
    h = jnp.maximum(a_hat @ (x @ w1) + b1, 0.0)
    z = a_hat @ (h @ w2) + b2
    return jax.nn.log_softmax(z, axis=1)


if __name__ == "__main__":
    # Small synthetic "Cora-like" graph; parameters initialized in-script.
    # TODO(synk): Planetoid dataset loading / accuracy+test helpers are
    # host-side glue with no kernel equivalent.
    N = 8          # num nodes
    F_IN = 32      # num_node_features
    H = 16         # hidden size of gcn1
    C = 4          # num_classes
    E = 16         # num edges

    key = jax.random.PRNGKey(0)
    kx, ke, kw1, kw2 = jax.random.split(key, 4)

    x = jax.random.normal(kx, (N, F_IN), dtype=jnp.float32)
    edge_index = jax.random.randint(ke, (2, E), 0, N, dtype=jnp.int32)

    w1 = jax.random.normal(kw1, (F_IN, H), dtype=jnp.float32) * jnp.sqrt(
        2.0 / (F_IN + H))
    b1 = jnp.zeros((1, H), dtype=jnp.float32)
    w2 = jax.random.normal(kw2, (H, C), dtype=jnp.float32) * jnp.sqrt(
        2.0 / (H + C))
    b2 = jnp.zeros((1, C), dtype=jnp.float32)

    ref = gcn_reference(x, edge_index, w1, b1, w2, b2)

    # Exercise the auto path plus both propagate strategies explicitly.
    for mode in ("auto", "streamed", "fused"):
        out = jax.block_until_ready(
            gcn_forward(x, edge_index, w1, b1, w2, b2, propagate_mode=mode))
        assert out.shape == (N, C)
        # rows of log_softmax must exp-sum to 1 (softmax math is done in f32)
        assert jnp.allclose(jnp.sum(jnp.exp(out), axis=1), 1.0, atol=1e-5), mode
        # check against the f32 reference; tolerance accounts for bf16 operands
        assert jnp.max(jnp.abs(out - ref)) < 0.15, mode

    print("KERNEL_OK")
</pallas_src>

<mosaic_0001>
module attributes {stable_mosaic.version = 11 : i64} {
  func.func @_transform_kernel(%arg0: i32, %arg1: memref<32x128xbf16, #tpu.memory_space<vmem>>, %arg2: memref<128x128xbf16, #tpu.memory_space<vmem>>, %arg3: memref<32x1xf32, #tpu.memory_space<vmem>>, %arg4: memref<32x128xbf16, #tpu.memory_space<vmem>>) attributes {dimension_semantics = [#tpu.dimension_semantics<parallel>], iteration_bounds = array<i64: 1>, scalar_prefetch = 0 : i64, scratch_operands = 0 : i64, tpu.core_type = #tpu.core_type<tc>, window_params = [{transform_indices = @transform_0, window_bounds = array<i64: 32, 128>}, {pipeline_mode = #tpu.pipeline_mode<synchronous>, transform_indices = @transform_1, window_bounds = array<i64: 128, 128>}, {transform_indices = @transform_2, window_bounds = array<i64: 32, 1>}, {transform_indices = @transform_3, window_bounds = array<i64: 32, 128>}]} {
    %c0 = arith.constant 0 : index
    %c0_0 = arith.constant 0 : index
    %0 = vector.load %arg1[%c0, %c0_0] : memref<32x128xbf16, #tpu.memory_space<vmem>>, vector<32x128xbf16>
    %c0_1 = arith.constant 0 : index
    %c0_2 = arith.constant 0 : index
    %1 = vector.load %arg2[%c0_1, %c0_2] : memref<128x128xbf16, #tpu.memory_space<vmem>>, vector<128x128xbf16>
    %cst = arith.constant dense<0.000000e+00> : vector<32x128xf32>
    %2 = tpu.matmul %0, %1, %cst {dimension_numbers = #tpu.dot_dimension_numbers<[1], [0], [0], [1], [0, 0, 1, 1], [], []>} : vector<32x128xbf16>, vector<128x128xbf16>, vector<32x128xf32> -> vector<32x128xf32>
    %c0_3 = arith.constant 0 : index
    %c0_4 = arith.constant 0 : index
    %3 = vector.load %arg3[%c0_3, %c0_4] : memref<32x1xf32, #tpu.memory_space<vmem>>, vector<32x1xf32>
    %4 = vector.broadcast %3 : vector<32x1xf32> to vector<32x128xf32>
    %5 = arith.mulf %4, %2 : vector<32x128xf32>
    %6 = arith.truncf %5 : vector<32x128xf32> to vector<32x128xbf16>
    %c0_5 = arith.constant 0 : index
    %c0_6 = arith.constant 0 : index
    %7 = vector.load %arg4[%c0_5, %c0_6] : memref<32x128xbf16, #tpu.memory_space<vmem>>, vector<32x128xbf16>
    tpu.vector_store %arg4[%c0_5, %c0_6], %6 {strides = array<i32>} : memref<32x128xbf16, #tpu.memory_space<vmem>>, vector<32x128xbf16>,
    return
  }
  func.func @transform_0(%arg0: i32) -> (i32, i32) {
    %c0_i32 = arith.constant 0 : i32
    %c0_i32_0 = arith.constant 0 : i32
    return %arg0, %c0_i32 : i32, i32
  }
  func.func @transform_1(%arg0: i32) -> (i32, i32) {
    %c0_i32 = arith.constant 0 : i32
    %c0_i32_0 = arith.constant 0 : i32
    %c0_i32_1 = arith.constant 0 : i32
    return %c0_i32, %c0_i32_0 : i32, i32
  }
  func.func @transform_2(%arg0: i32) -> (i32, i32) {
    %c0_i32 = arith.constant 0 : i32
    %c0_i32_0 = arith.constant 0 : i32
    return %arg0, %c0_i32 : i32, i32
  }
  func.func @transform_3(%arg0: i32) -> (i32, i32) {
    %c0_i32 = arith.constant 0 : i32
    %c0_i32_0 = arith.constant 0 : i32
    return %arg0, %c0_i32 : i32, i32
  }
}

</mosaic_0001>

<bundles_post_ra>
// kernel: tpu_custom_call.1
= control target key start
LH: loop header
LB: loop body
LE: loop exit
PB: predicated region body
PF: predicated region fallthrough
CT: control target
= control target key end

     0   :  { %8 = vsyncpa [#allocation3], 0  ;;  %s421_s0 = inlined_call_operand.vmem [shape: bf16[32,128], index: 0, kind: input, shape index: {}]   ;;  %s422_s1 = inlined_call_operand.hbm [shape: bf16[128,128], index: 1, kind: input, shape index: {}]   ;;  %s423_s2 = inlined_call_operand.vmem [shape: f32[32,1], index: 2, kind: input, shape index: {}]   ;;  %s424_s3 = inlined_call_operand.hbm [shape: bf16[32,128], index: 3, kind: output, shape index: {}]  }
   0x1   :  { %9 = vsyncpa [#allocation4], 0  ;;  %s348_s12 = smov [#allocation2]   ;;  %s300_s16 = scalar_lea.hbm %s422_s1, 1024 }
   0x2   :  { %s17_s13 = sshll.u32 %s348_s12, 4  ;;  %p301_p0 = scmp.ne.s32.totalorder %s422_s1, %s300_s16  ;;  %s18_s13 = int_to_ptr.vmem [resolvable:$true] %s17_s13 }
   0x3   :  { %p304_p1 = scmp.lt.u32.totalorder %s300_s16, %s422_s1 }
   0x5   :  { %p306_p2 = pnand %p304_p1, %p301_p0 }
   0x7   :  { %309 = shalt.err (!%p306_p2)
}
   0x8   :  { %s310_s21 = scalar_lea.vmem %s18_s13, 1024  ;;  %p315_p4 = scmp.lt.s32.totalorder %s18_s13, %s18_s13 }
   0x9   :  { %p311_p3 = scmp.ne.s32.totalorder %s18_s13, %s310_s21  ;;  %p316_p5 = scmp.lt.s32.totalorder %s310_s21, %s310_s21 }
   0xb   :  { %p317_p6 = por %p316_p5, %p315_p4 }
   0xd   :  { %p318_p7 = pnand %p317_p6, %p311_p3 }
   0xf   :  { %321 = shalt.err (!%p318_p7)
}
  0x10   :  { %s349_s22 = smov 64   ;;  %s350_s23 = smov 4  }
  0x11   :  { %23 = dma.hbm_to_vmem [thread:$0]  %s422_s1, 1024, %s18_s13, [#allocation3], %s349_s22, %s349_s22, %s350_s23  }
  0x12   :  { %344 = dma.done.wait [#allocation3], 1024  }
  0x13   :  { %345 = vsyncadd [#allocation3], 4294966272  ;;  %v351_v0 = vmov 0   ;;  %v290_v1 = vld [vmem:[#allocation2] sm:$0xff]   ;;  %v291_v2 = vld [vmem:[#allocation2 + $0x8] sm:$0xff]  }
  0x14   :  { %289 = vset.pattern.permute.xlu1 %v351_v0  ;;  %288 = vset.pattern.permute.xlu0 %v351_v0  ;;  %v292_v3 = vld [vmem:[#allocation2 + $0x10] sm:$0xff]   ;;  %v293_v4 = vld [vmem:[#allocation2 + $0x18] sm:$0xff]   ;;  %v298_v5 = vld [vmem:[%s421_s0] sm:$0xff]  }
  0x15   :  { %263 = vmatprep.subr.bf16.mxu0 %v290_v1  ;;  %279 = vmatprep.mubr.bf16.mxu0 %v298_v5  ;;  %v161_v6 = vld [vmem:[%s423_s2 + $0x10] sm:$0xff]  ;;  %v159_v7 = vld [vmem:[%s423_s2] sm:$0xff]  ;;  %v162_v9 = vld [vmem:[%s423_s2 + $0x18] sm:$0xff] }
  0x16   :  { %264 = vmatpush3.bf16.msra.mxu0 %v290_v1  ;;  %175 = vperm.xlu1 %289, %v161_v6   ;;  %v294_v8 = vld [vmem:[#allocation2 + $0x20] sm:$0xff]   ;;  %v160_v10 = vld [vmem:[%s423_s2 + $0x8] sm:$0xff]  ;;  %v296_v12 = vld [vmem:[#allocation2 + $0x30] sm:$0xff]   ;;  %s352_s2 = smov [#allocation5]  }
  0x17   :  { %265 = vmatprep.subr.bf16.mxu0 %v291_v2  ;;  %165 = vperm.xlu0 %288, %v159_v7   ;;  %v295_v11 = vld [vmem:[#allocation2 + $0x28] sm:$0xff]   ;;  %v297_v13 = vld [vmem:[#allocation2 + $0x38] sm:$0xff]   ;;  %s212_s10 = sshll.u32 %s352_s2, 4  ;;  %s213_s10 = int_to_ptr.vmem [resolvable:$true] %s212_s10 }
  0x18   :  { %v299_v14 = vld [vmem:[%s421_s0 + $0x8] sm:$0xff]   ;;  %s322_s0 = scalar_lea.vmem %s213_s10, 256  ;;  %p327_p9 = scmp.lt.s32.totalorder %s213_s10, %s213_s10 }
  0x19   :  { %p323_p8 = scmp.ne.s32.totalorder %s213_s10, %s322_s0  ;;  %p328_p10 = scmp.lt.s32.totalorder %s322_s0, %s322_s0 }
  0x1a   :  { %266 = vmatpush3.bf16.msra.mxu0 %v291_v2  ;;  %180 = vperm.xlu1 %289, %v162_v9  }
  0x1b   :  { %267 = vmatprep.subr.bf16.mxu0 %v292_v3  ;;  %170 = vperm.xlu0 %288, %v160_v10   ;;  %p329_p11 = por %p328_p10, %p327_p9 }
  0x1d   :  { %p330_p12 = pnand %p329_p11, %p323_p8 }
  0x1e   :  { %268 = vmatpush3.bf16.msra.mxu0 %v292_v3 }
  0x1f   :  { %269 = vmatprep.subr.bf16.mxu0 %v293_v4 }
  0x22   :  { %270 = vmatpush3.bf16.msra.mxu0 %v293_v4 }
  0x23   :  { %271 = vmatprep.subr.bf16.mxu0 %v294_v8 }
  0x26   :  { %272 = vmatpush3.bf16.msra.mxu0 %v294_v8 }
  0x27   :  { %273 = vmatprep.subr.bf16.mxu0 %v295_v11 }
  0x2a   :  { %274 = vmatpush3.bf16.msra.mxu0 %v295_v11 }
  0x2b   :  { %275 = vmatprep.subr.bf16.mxu0 %v296_v12 }
  0x2e   :  { %276 = vmatpush3.bf16.msra.mxu0 %v296_v12 }
  0x2f   :  { %277 = vmatprep.subr.bf16.mxu0 %v297_v13 }
  0x32   :  { %278 = vmatpush3.bf16.msra.mxu0 %v297_v13 }
  0x35   :  { %280 = vmatmul.mubr.bf16.vlgmr.msra.gmra.mrb[0].mxu0 %v299_v14 }
  0x95   :  { %v176_v15 = vpop.permute.xlu1 %175 }
  0x96   :  { %v166_v16 = vpop.permute.xlu0 %165 }
  0x99   :  { %v181_v19 = vpop.permute.xlu1 %180 }
  0x9a   :  { %v171_v21 = vpop.permute.xlu0 %170 }
 0x108   :  { %v281_v17 = vpop.f32.mrb[0].mxu0 }
 0x109   :  { %v144_v18 = vpop.f32.mrb[1].mxu0  ;;  %v185_v22 = vmul.f32 %v281_v17, %v176_v15 }
 0x10a   :  { %v282_v20 = vpop.f32.mrb[2].mxu0  ;;  %v183_v25 = vmul.f32 %v166_v16, %v144_v18 }
 0x10b   :  { %v186_v23 = vmul.f32 %v282_v20, %v181_v19  ;;  %v147_v24 = vpop.f32.mrb[3].mxu0 }
 0x10c   :  { %v184_v26 = vmul.f32 %v171_v21, %v147_v24 }
 0x10d   :  { %v250_v27 = vpack.c.bf16 %v186_v23, %v185_v22 }
 0x10e   :  { %v245_v28 = vpack.c.bf16 %v184_v26, %v183_v25 }
 0x10f   :  { %252 = vst [vmem:[#allocation5 + $0x8] sm:$0xff] %v250_v27  }
 0x110   :  { %246 = vst [vmem:[#allocation5] sm:$0xff] %v245_v28  }
 0x111   :  { %333 = shalt.err (!%p330_p12)
}
 0x112   :  { %s334_s13 = scalar_lea.hbm %s424_s3, 256 }
 0x113   :  { %p335_p13 = scmp.ne.s32.totalorder %s424_s3, %s334_s13  ;;  %p338_p0 = scmp.lt.u32.totalorder %s334_s13, %s424_s3 }
 0x115   :  { %p340_p1 = pnand %p338_p0, %p335_p13 }
 0x117   :  { %343 = shalt.err (!%p340_p1)
}
 0x118   :  { %218 = dma.vmem_to_hbm [thread:$0]  %s213_s10, 256, %s424_s3, [#allocation4], %s349_s22, %s349_s22, %s350_s23  }
 0x119   :  { %346 = dma.done.wait [#allocation4], 256  }
 0x11a   :  { %347 = vsyncadd [#allocation4], 4294967040 }
 0x11b   :  { %222 = vsyncpa [#allocation3], 1 }
 0x11c   :  { %223 = vsyncpa [#allocation4], 1 }

</bundles_post_ra>
